<compile_context>
chip_gen: v7x
topology: tpu7x:2x2x1
jax: 0.10.0
libtpu: 0.0.40
codegen_flags: <defaults>
</compile_context>

<pallas_src>
import functools

import numpy as np

import jax
import jax.numpy as jnp
from jax.experimental import pallas as pl
from jax.experimental.pallas import tpu as pltpu


LANE = 128
_MIB = 1024 * 1024


# --------------------------------------------------------------------------
# Small helpers
# --------------------------------------------------------------------------
def _round_up(n, m):
    return ((n + m - 1) // m) * m


def _cdiv(a, b):
    return -(-a // b)


def _sublane_for(dtype):
    """Rows per fully-packed vreg sublane group for this dtype."""
    isz = np.dtype(dtype).itemsize
    return {4: 8, 2: 16, 1: 32}.get(isz, 8)


def _vmem_capacity_bytes():
    """Per-core VMEM capacity; conservative default if the query is unavailable."""
    try:
        return int(pltpu.get_tpu_info().vmem_capacity_bytes)
    except Exception:
        return 64 * _MIB  # v7x per-TC VMEM; safe lower bound for all generations


def _vmem_limit(est_bytes, cap_bytes):
    """Scoped-VMEM limit: generous headroom but below physical capacity."""
    hi = max(32 * _MIB, cap_bytes - 16 * _MIB)
    return int(min(hi, max(32 * _MIB, int(1.5 * est_bytes))))


# --------------------------------------------------------------------------
# Kernels
# --------------------------------------------------------------------------
def _fused_mlp_kernel(*refs, num_layers, compute_dtype):
    """All layers computed on one resident batch tile; weights resident in VMEM.

    refs = (x_ref, w0, b0, w1, b1, ..., w_{L-1}, b_{L-1}, out_ref)
    """
    x_ref = refs[0]
    out_ref = refs[-1]
    param_refs = refs[1:-1]

    h = x_ref[...]                                    # compute_dtype
    for layer in range(num_layers):
        w_ref = param_refs[2 * layer]
        b_ref = param_refs[2 * layer + 1]
        acc = jnp.dot(h, w_ref[...], preferred_element_type=jnp.float32)
        acc = acc + b_ref[...]                        # bias is f32; add in f32
        if layer != num_layers - 1:
            # ReLU + downcast epilogue in the (possibly narrow) compute dtype.
            h = jnp.maximum(acc.astype(compute_dtype), 0)
        else:
            h = acc
    out_ref[...] = h.astype(out_ref.dtype)


def _linear_kernel(x_ref, w_ref, b_ref, o_ref, acc_ref, *, apply_relu):
    """One Linear(+ReLU) layer, tiled over (M, N, K) with a K-axis accumulator."""
    k = pl.program_id(2)

    @pl.when(k == 0)
    def _():
        acc_ref[...] = jnp.zeros_like(acc_ref)

    acc_ref[...] += jnp.dot(x_ref[...], w_ref[...],
                            preferred_element_type=jnp.float32)

    @pl.when(k == pl.num_programs(2) - 1)
    def _():
        r = acc_ref[...] + b_ref[...]                 # f32 bias add
        if apply_relu:
            r = jnp.maximum(r, 0.0)
        o_ref[...] = r.astype(o_ref.dtype)


# --------------------------------------------------------------------------
# Tiling / budget helpers
# --------------------------------------------------------------------------
def _fused_footprint(tile, padded_dims, itemsize, out_itemsize, resident_bytes):
    """Estimated VMEM working set for the fused kernel at a given batch tile."""
    max_dim = max(padded_dims)
    pd_in, pd_out = padded_dims[0], padded_dims[-1]
    return int(resident_bytes
               + 2 * tile * pd_in * itemsize              # double-buffered input tile
               + 2 * tile * pd_out * out_itemsize         # double-buffered output tile
               + tile * max_dim * (4 + 2 * itemsize))     # f32 acc + narrow copy + live input act


def _fused_batch_tile(batch, padded_dims, itemsize, out_itemsize,
                      resident_bytes, budget, sublane, target_steps=4):
    """Largest batch tile that fits the budget, with padding-waste and
    megacore (>= target_steps grid steps) control."""
    max_tile = sublane
    for cand in (2048, 1024, 512, 256, 128, 64, 32, 16, 8):
        if cand < sublane:
            continue
        if _fused_footprint(cand, padded_dims, itemsize, out_itemsize,
                            resident_bytes) <= budget:
            max_tile = cand
            break

    n_tiles = max(1, _cdiv(batch, max_tile))
    if batch >= target_steps * sublane:
        n_tiles = max(n_tiles, target_steps)       # >=2 steps per v7x TensorCore
    tile = _round_up(_cdiv(batch, n_tiles), sublane)
    return max(sublane, tile)


def _stream_batch_tile(batch, sublane, max_tile=512):
    """Independent (large) M tile for the weight-streaming per-layer path."""
    n_tiles = max(1, _cdiv(batch, max_tile))
    tile = _round_up(_cdiv(batch, n_tiles), sublane)
    return max(sublane, min(tile, _round_up(max_tile, sublane)))


def _pick_tile(dim, candidates=(512, 256, 128)):
    """Largest lane-aligned tile dividing a (128-padded) feature dim."""
    for t in candidates:
        if dim % t == 0:
            return t
    return dim


# --------------------------------------------------------------------------
# Wrappers
# --------------------------------------------------------------------------
def _pad_params(params, padded_dims, compute_dtype):
    """Zero-pad weights/biases to lane multiples; weights in compute dtype."""
    padded = []
    for idx, (w, b) in enumerate(params):
        pin, pout = padded_dims[idx], padded_dims[idx + 1]
        wp = jnp.zeros((pin, pout), compute_dtype)
        wp = wp.at[: w.shape[0], : w.shape[1]].set(w.astype(compute_dtype))
        bp = jnp.zeros((1, pout), jnp.float32)
        bp = bp.at[:, : b.shape[1]].set(b.astype(jnp.float32))
        padded.append((wp, bp))
    return padded


def _fused_forward(x_pad, padded_params, *, batch_tile, out_dtype,
                   vmem_limit_bytes, cost):
    b_pad, pd_in = x_pad.shape
    pd_out = padded_params[-1][0].shape[1]
    num_layers = len(padded_params)
    grid = (b_pad // batch_tile,)

    # Grid-invariant weights/biases: whole-array VMEM residency (single copy,
    # no per-step double buffering, no pipeline DMAs).
    resident_spec = pl.BlockSpec(memory_space=pltpu.MemorySpace.VMEM)

    in_specs = [pl.BlockSpec((batch_tile, pd_in), lambda i: (i, 0))]
    flat_args = [x_pad]
    for (w, b) in padded_params:
        in_specs.append(resident_spec)
        in_specs.append(resident_spec)
        flat_args.extend([w, b])
    out_specs = pl.BlockSpec((batch_tile, pd_out), lambda i: (i, 0))

    kernel = functools.partial(_fused_mlp_kernel, num_layers=num_layers,
                               compute_dtype=x_pad.dtype)
    return pl.pallas_call(
        kernel,
        out_shape=jax.ShapeDtypeStruct((b_pad, pd_out), out_dtype),
        grid_spec=pltpu.PrefetchScalarGridSpec(
            num_scalar_prefetch=0,
            grid=grid,
            in_specs=in_specs,
            out_specs=out_specs,
        ),
        compiler_params=pltpu.CompilerParams(
            dimension_semantics=("parallel",),
            vmem_limit_bytes=vmem_limit_bytes,
        ),
        cost_estimate=cost,
    )(*flat_args)


def _linear_layer(x, w, b, *, apply_relu, out_dtype, batch_tile, vmem_cap):
    """Streaming per-layer Linear(+ReLU): weight tiles are DMA'd per grid step."""
    m, k_dim = x.shape
    _, n_dim = w.shape
    tn = _pick_tile(n_dim)
    tk = _pick_tile(k_dim)
    grid = (m // batch_tile, n_dim // tn, k_dim // tk)

    isz_in = x.dtype.itemsize
    out_isz = np.dtype(out_dtype).itemsize
    est = (2 * (batch_tile * tk + tk * tn) * isz_in
           + 2 * tn * 4
           + 2 * batch_tile * tn * out_isz
           + batch_tile * tn * 4)
    flops = 2 * m * k_dim * n_dim
    bytes_accessed = int(x.size * isz_in + w.size * w.dtype.itemsize
                         + b.size * 4 + m * n_dim * out_isz)

    kernel = functools.partial(_linear_kernel, apply_relu=apply_relu)
    return pl.pallas_call(
        kernel,
        out_shape=jax.ShapeDtypeStruct((m, n_dim), out_dtype),
        grid_spec=pltpu.PrefetchScalarGridSpec(
            num_scalar_prefetch=0,
            grid=grid,
            in_specs=[
                pl.BlockSpec((batch_tile, tk), lambda i, j, k: (i, k)),
                pl.BlockSpec((tk, tn), lambda i, j, k: (k, j)),
                pl.BlockSpec((1, tn), lambda i, j, k: (0, j)),
            ],
            out_specs=pl.BlockSpec((batch_tile, tn), lambda i, j, k: (i, j)),
            scratch_shapes=[pltpu.VMEM((batch_tile, tn), jnp.float32)],
        ),
        compiler_params=pltpu.CompilerParams(
            dimension_semantics=("parallel", "parallel", "arbitrary"),
            vmem_limit_bytes=_vmem_limit(est, vmem_cap),
        ),
        cost_estimate=pl.CostEstimate(flops=flops, transcendentals=0,
                                      bytes_accessed=bytes_accessed),
    )(x, w, b)


def _layerwise_forward(x_pad, padded_params, *, batch_tile, out_dtype,
                       compute_dtype, vmem_cap):
    h = x_pad
    num_layers = len(padded_params)
    for idx, (w, b) in enumerate(padded_params):
        last = idx == num_layers - 1
        h = _linear_layer(h, w, b,
                          apply_relu=not last,
                          out_dtype=out_dtype if last else compute_dtype,
                          batch_tile=batch_tile,
                          vmem_cap=vmem_cap)
    return h


def mlp_forward(x, params, *, compute_dtype=jnp.bfloat16, batch_tile=None,
                force_layerwise=False):
    """Run the MLP forward pass.

    x:      [B, input_dim]
    params: list of (w, b) with w: [in, out], b: [1, out]
    """
    batch, in_dim = x.shape
    out_dim = params[-1][0].shape[1]
    out_dtype = x.dtype
    compute_dtype = np.dtype(compute_dtype)
    isz = compute_dtype.itemsize
    out_isz = np.dtype(out_dtype).itemsize
    sublane = _sublane_for(compute_dtype)

    dims = [in_dim] + [w.shape[1] for (w, _) in params]
    padded_dims = [_round_up(d, LANE) for d in dims]
    num_layers = len(params)

    weight_bytes = sum(padded_dims[i] * padded_dims[i + 1]
                       for i in range(num_layers)) * isz
    bias_bytes = sum(padded_dims[1:]) * 4
    resident_bytes = weight_bytes + bias_bytes

    # Generation-aware budgets: ~48/45 MiB on v7x (64 MiB VMEM per TC),
    # ~96/90 MiB on v5e/v6e (128 MiB VMEM).
    cap = _vmem_capacity_bytes()
    fused_budget = int(0.75 * cap)
    resident_limit = int(0.70 * cap)

    use_layerwise = force_layerwise or resident_bytes > resident_limit

    if batch_tile is None:
        if use_layerwise:
            batch_tile = _stream_batch_tile(batch, sublane)
        else:
            batch_tile = _fused_batch_tile(batch, padded_dims, isz, out_isz,
                                           resident_bytes, fused_budget, sublane)
    batch_tile = max(sublane, _round_up(batch_tile, sublane))

    b_pad = _round_up(batch, batch_tile)
    x_pad = jnp.zeros((b_pad, padded_dims[0]), compute_dtype)
    x_pad = x_pad.at[:batch, :in_dim].set(x.astype(compute_dtype))

    padded_params = _pad_params(params, padded_dims, compute_dtype)

    flops = 2 * b_pad * sum(padded_dims[i] * padded_dims[i + 1]
                            for i in range(num_layers))
    bytes_accessed = int(x_pad.size * isz + resident_bytes
                         + b_pad * padded_dims[-1] * out_isz)
    cost = pl.CostEstimate(flops=flops, transcendentals=0,
                           bytes_accessed=bytes_accessed)

    if use_layerwise:
        out_pad = _layerwise_forward(x_pad, padded_params, batch_tile=batch_tile,
                                     out_dtype=out_dtype,
                                     compute_dtype=compute_dtype,
                                     vmem_cap=cap)
    else:
        est = _fused_footprint(batch_tile, padded_dims, isz, out_isz,
                               resident_bytes)
        out_pad = _fused_forward(x_pad, padded_params, batch_tile=batch_tile,
                                 out_dtype=out_dtype,
                                 vmem_limit_bytes=_vmem_limit(est, cap),
                                 cost=cost)

    return out_pad[:batch, :out_dim]


# --------------------------------------------------------------------------
# Init / reference (mirror nn.Linear defaults and nn.Sequential structure)
# --------------------------------------------------------------------------
def init_mlp_params(key, input_dim, output_dim, hidden_layers, hidden_dim):
    if hidden_layers == 0:
        dims = [(input_dim, output_dim)]
    else:
        dims = [(input_dim, hidden_dim)]
        dims += [(hidden_dim, hidden_dim)] * hidden_layers
        dims += [(hidden_dim, output_dim)]

    params = []
    for (fan_in, fan_out) in dims:
        key, wk, bk = jax.random.split(key, 3)
        bound = 1.0 / jnp.sqrt(jnp.float32(fan_in))
        w = jax.random.uniform(wk, (fan_in, fan_out), jnp.float32, -bound, bound)
        b = jax.random.uniform(bk, (1, fan_out), jnp.float32, -bound, bound)
        params.append((w, b))
    return params


def mlp_reference(x, params):
    h = x
    for i, (w, b) in enumerate(params):
        h = h @ w + b
        if i != len(params) - 1:
            h = jnp.maximum(h, 0.0)
    return h


if __name__ == "__main__":
    key = jax.random.PRNGKey(0)
    key, xk, xk2 = jax.random.split(key, 3)

    # Small shapes consistent with the module:
    # MLP(input_dim=4, output_dim=2, hidden_layers=1, hidden_dim=32), batch=16.
    B, input_dim, output_dim, hidden_layers, hidden_dim = 16, 4, 2, 1, 32
    x = jax.random.normal(xk, (B, input_dim), jnp.float32)
    params = init_mlp_params(key, input_dim, output_dim, hidden_layers, hidden_dim)
    ref = mlp_reference(x, params)

    # 1) Default fused path: bf16 MXU matmuls with f32 accumulation.
    out_bf16 = jax.block_until_ready(mlp_forward(x, params))
    assert out_bf16.shape == (B, output_dim), out_bf16.shape
    assert jnp.allclose(out_bf16, ref, atol=5e-2, rtol=5e-2), "bf16 fused mismatch"

    # 2) f32 fused path: tight check that padding / layer semantics are exact.
    out_f32 = jax.block_until_ready(mlp_forward(x, params,
                                                compute_dtype=jnp.float32))
    assert jnp.allclose(out_f32, ref, atol=1e-5, rtol=1e-5), "f32 fused mismatch"

    # 3) Layer-wise streaming fallback (auto-selected when resident weights
    #    exceed the VMEM budget); exercised explicitly here.
    out_lw = jax.block_until_ready(mlp_forward(x, params, force_layerwise=True))
    assert jnp.allclose(out_lw, ref, atol=5e-2, rtol=5e-2), "layer-wise mismatch"

    # 4) Multi-step grid + non-tile-multiple batch (exercises padding/megacore
    #    tiling logic) with an exact f32 check.
    B2 = 100
    x2 = jax.random.normal(xk2, (B2, input_dim), jnp.float32)
    ref2 = mlp_reference(x2, params)
    out2 = jax.block_until_ready(mlp_forward(x2, params,
                                             compute_dtype=jnp.float32))
    assert out2.shape == (B2, output_dim), out2.shape
    assert jnp.allclose(out2, ref2, atol=1e-5, rtol=1e-5), "multi-step mismatch"

    print("KERNEL_OK")
</pallas_src>

<mosaic_0001>
module attributes {stable_mosaic.version = 11 : i64} {
  func.func @_fused_mlp_kernel(%arg0: i32, %arg1: memref<16x128xbf16, #tpu.memory_space<vmem>>, %arg2: memref<128x128xbf16, #tpu.memory_space<vmem>>, %arg3: memref<1x128xf32, #tpu.memory_space<vmem>>, %arg4: memref<128x128xbf16, #tpu.memory_space<vmem>>, %arg5: memref<1x128xf32, #tpu.memory_space<vmem>>, %arg6: memref<128x128xbf16, #tpu.memory_space<vmem>>, %arg7: memref<1x128xf32, #tpu.memory_space<vmem>>, %arg8: memref<16x128xf32, #tpu.memory_space<vmem>>) attributes {dimension_semantics = [#tpu.dimension_semantics<parallel>], iteration_bounds = array<i64: 1>, scalar_prefetch = 0 : i64, scratch_operands = 0 : i64, tpu.core_type = #tpu.core_type<tc>, window_params = [{transform_indices = @transform_0, window_bounds = array<i64: 16, 128>}, {pipeline_mode = #tpu.pipeline_mode<synchronous>, transform_indices = @transform_1, window_bounds = array<i64: 128, 128>}, {pipeline_mode = #tpu.pipeline_mode<synchronous>, transform_indices = @transform_2, window_bounds = array<i64: 1, 128>}, {pipeline_mode = #tpu.pipeline_mode<synchronous>, transform_indices = @transform_3, window_bounds = array<i64: 128, 128>}, {pipeline_mode = #tpu.pipeline_mode<synchronous>, transform_indices = @transform_4, window_bounds = array<i64: 1, 128>}, {pipeline_mode = #tpu.pipeline_mode<synchronous>, transform_indices = @transform_5, window_bounds = array<i64: 128, 128>}, {pipeline_mode = #tpu.pipeline_mode<synchronous>, transform_indices = @transform_6, window_bounds = array<i64: 1, 128>}, {transform_indices = @transform_7, window_bounds = array<i64: 16, 128>}]} {
    %c0 = arith.constant 0 : index
    %c0_0 = arith.constant 0 : index
    %0 = vector.load %arg1[%c0, %c0_0] : memref<16x128xbf16, #tpu.memory_space<vmem>>, vector<16x128xbf16>
    %c0_1 = arith.constant 0 : index
    %c0_2 = arith.constant 0 : index
    %1 = vector.load %arg2[%c0_1, %c0_2] : memref<128x128xbf16, #tpu.memory_space<vmem>>, vector<128x128xbf16>
    %cst = arith.constant dense<0.000000e+00> : vector<16x128xf32>
    %2 = tpu.matmul %0, %1, %cst {dimension_numbers = #tpu.dot_dimension_numbers<[1], [0], [0], [1], [0, 0, 1, 1], [], []>} : vector<16x128xbf16>, vector<128x128xbf16>, vector<16x128xf32> -> vector<16x128xf32>
    %c0_3 = arith.constant 0 : index
    %c0_4 = arith.constant 0 : index
    %3 = vector.load %arg3[%c0_3, %c0_4] : memref<1x128xf32, #tpu.memory_space<vmem>>, vector<1x128xf32>
    %4 = vector.broadcast %3 : vector<1x128xf32> to vector<16x128xf32>
    %5 = arith.addf %2, %4 : vector<16x128xf32>
    %6 = arith.truncf %5 : vector<16x128xf32> to vector<16x128xbf16>
    %cst_5 = arith.constant 0.000000e+00 : bf16
    %7 = vector.broadcast %cst_5 : bf16 to vector<16x128xbf16>
    %8 = arith.maximumf %6, %7 : vector<16x128xbf16>
    %c0_6 = arith.constant 0 : index
    %c0_7 = arith.constant 0 : index
    %9 = vector.load %arg4[%c0_6, %c0_7] : memref<128x128xbf16, #tpu.memory_space<vmem>>, vector<128x128xbf16>
    %cst_8 = arith.constant dense<0.000000e+00> : vector<16x128xf32>
    %10 = tpu.matmul %8, %9, %cst_8 {dimension_numbers = #tpu.dot_dimension_numbers<[1], [0], [0], [1], [0, 0, 1, 1], [], []>} : vector<16x128xbf16>, vector<128x128xbf16>, vector<16x128xf32> -> vector<16x128xf32>
    %c0_9 = arith.constant 0 : index
    %c0_10 = arith.constant 0 : index
    %11 = vector.load %arg5[%c0_9, %c0_10] : memref<1x128xf32, #tpu.memory_space<vmem>>, vector<1x128xf32>
    %12 = vector.broadcast %11 : vector<1x128xf32> to vector<16x128xf32>
    %13 = arith.addf %10, %12 : vector<16x128xf32>
    %14 = arith.truncf %13 : vector<16x128xf32> to vector<16x128xbf16>
    %cst_11 = arith.constant 0.000000e+00 : bf16
    %15 = vector.broadcast %cst_11 : bf16 to vector<16x128xbf16>
    %16 = arith.maximumf %14, %15 : vector<16x128xbf16>
    %c0_12 = arith.constant 0 : index
    %c0_13 = arith.constant 0 : index
    %17 = vector.load %arg6[%c0_12, %c0_13] : memref<128x128xbf16, #tpu.memory_space<vmem>>, vector<128x128xbf16>
    %cst_14 = arith.constant dense<0.000000e+00> : vector<16x128xf32>
    %18 = tpu.matmul %16, %17, %cst_14 {dimension_numbers = #tpu.dot_dimension_numbers<[1], [0], [0], [1], [0, 0, 1, 1], [], []>} : vector<16x128xbf16>, vector<128x128xbf16>, vector<16x128xf32> -> vector<16x128xf32>
    %c0_15 = arith.constant 0 : index
    %c0_16 = arith.constant 0 : index
    %19 = vector.load %arg7[%c0_15, %c0_16] : memref<1x128xf32, #tpu.memory_space<vmem>>, vector<1x128xf32>
    %20 = vector.broadcast %19 : vector<1x128xf32> to vector<16x128xf32>
    %21 = arith.addf %18, %20 : vector<16x128xf32>
    %c0_17 = arith.constant 0 : index
    %c0_18 = arith.constant 0 : index
    %22 = vector.load %arg8[%c0_17, %c0_18] : memref<16x128xf32, #tpu.memory_space<vmem>>, vector<16x128xf32>
    tpu.vector_store %arg8[%c0_17, %c0_18], %21 {strides = array<i32>} : memref<16x128xf32, #tpu.memory_space<vmem>>, vector<16x128xf32>,
    return
  }
  func.func @transform_0(%arg0: i32) -> (i32, i32) {
    %c0_i32 = arith.constant 0 : i32
    %c0_i32_0 = arith.constant 0 : i32
    return %arg0, %c0_i32 : i32, i32
  }
  func.func @transform_1(%arg0: i32) -> (i32, i32) {
    %c0_i32 = arith.constant 0 : i32
    %c0_i32_0 = arith.constant 0 : i32
    %c0_i32_1 = arith.constant 0 : i32
    return %c0_i32, %c0_i32_0 : i32, i32
  }
  func.func @transform_2(%arg0: i32) -> (i32, i32) {
    %c0_i32 = arith.constant 0 : i32
    %c0_i32_0 = arith.constant 0 : i32
    %c0_i32_1 = arith.constant 0 : i32
    return %c0_i32, %c0_i32_0 : i32, i32
  }
  func.func @transform_3(%arg0: i32) -> (i32, i32) {
    %c0_i32 = arith.constant 0 : i32
    %c0_i32_0 = arith.constant 0 : i32
    %c0_i32_1 = arith.constant 0 : i32
    return %c0_i32, %c0_i32_0 : i32, i32
  }
  func.func @transform_4(%arg0: i32) -> (i32, i32) {
    %c0_i32 = arith.constant 0 : i32
    %c0_i32_0 = arith.constant 0 : i32
    %c0_i32_1 = arith.constant 0 : i32
    return %c0_i32, %c0_i32_0 : i32, i32
  }
  func.func @transform_5(%arg0: i32) -> (i32, i32) {
    %c0_i32 = arith.constant 0 : i32
    %c0_i32_0 = arith.constant 0 : i32
    %c0_i32_1 = arith.constant 0 : i32
    return %c0_i32, %c0_i32_0 : i32, i32
  }
  func.func @transform_6(%arg0: i32) -> (i32, i32) {
    %c0_i32 = arith.constant 0 : i32
    %c0_i32_0 = arith.constant 0 : i32
    %c0_i32_1 = arith.constant 0 : i32
    return %c0_i32, %c0_i32_0 : i32, i32
  }
  func.func @transform_7(%arg0: i32) -> (i32, i32) {
    %c0_i32 = arith.constant 0 : i32
    %c0_i32_0 = arith.constant 0 : i32
    return %arg0, %c0_i32 : i32, i32
  }
}

</mosaic_0001>

<bundles_post_ra>
// kernel: tpu_custom_call.1
= control target key start
LH: loop header
LB: loop body
LE: loop exit
PB: predicated region body
PF: predicated region fallthrough
CT: control target
= control target key end

     0   :  { %12 = vsyncpa [#allocation3], 0  ;;  %s899_s0 = inlined_call_operand.hbm [shape: bf16[16,128], index: 0, kind: input, shape index: {}]   ;;  %s900_s1 = inlined_call_operand.hbm [shape: bf16[128,128], index: 1, kind: input, shape index: {}]   ;;  %s901_s2 = inlined_call_operand.vmem [shape: f32[1,128], index: 2, kind: input, shape index: {}]   ;;  %s902_s3 = inlined_call_operand.hbm [shape: bf16[128,128], index: 3, kind: input, shape index: {}]   ;;  %s903_s4 = inlined_call_operand.vmem [shape: f32[1,128], index: 4, kind: input, shape index: {}]   ;;  %s904_s5 = inlined_call_operand.hbm [shape: bf16[128,128], index: 5, kind: input, shape index: {}]   ;;  %s905_s6 = inlined_call_operand.vmem [shape: f32[1,128], index: 6, kind: input, shape index: {}]   ;;  %s906_s7 = inlined_call_operand.hbm [shape: f32[16,128], index: 7, kind: output, shape index: {}]  }
   0x1   :  { %13 = vsyncpa [#allocation6], 0 }
   0x2   :  { %14 = vsyncpa [#allocation9], 0 }
   0x3   :  { %15 = vsyncpa [#allocation4], 0  ;;  %s722_s24 = smov [#allocation5]   ;;  %s723_s26 = smov [#allocation2]  }
   0x4   :  { %s33_s25 = sshll.u32 %s722_s24, 4  ;;  %s21_s27 = sshll.u32 %s723_s26, 4  ;;  %s34_s25 = int_to_ptr.vmem [resolvable:$true] %s33_s25  ;;  %s774_s27 = int_to_ptr.vmem [resolvable:$true] %s21_s27 }
   0x5   :  { %s604_s30 = scalar_lea.hbm %s900_s1, 1024 }
   0x6   :  { %p605_p0 = scmp.ne.s32.totalorder %s900_s1, %s604_s30  ;;  %p608_p1 = scmp.lt.u32.totalorder %s604_s30, %s900_s1 }
   0x8   :  { %p610_p2 = pnand %p608_p1, %p605_p0 }
   0xa   :  { %613 = shalt.err (!%p610_p2)
}
   0xb   :  { %s614_s12 = scalar_lea.vmem %s34_s25, 1024  ;;  %p619_p4 = scmp.lt.s32.totalorder %s34_s25, %s34_s25 }
   0xc   :  { %p615_p3 = scmp.ne.s32.totalorder %s34_s25, %s614_s12  ;;  %p620_p5 = scmp.lt.s32.totalorder %s614_s12, %s614_s12 }
   0xe   :  { %p621_p6 = por %p620_p5, %p619_p4 }
  0x10   :  { %p622_p7 = pnand %p621_p6, %p615_p3 }
  0x12   :  { %625 = shalt.err (!%p622_p7)
}
  0x13   :  { %s724_s13 = smov 64   ;;  %s725_s14 = smov 4  }
  0x14   :  { %39 = dma.hbm_to_vmem [thread:$0]  %s900_s1, 1024, %s34_s25, [#allocation6], %s724_s13, %s724_s13, %s725_s14  }
  0x15   :  { %s626_s19 = scalar_lea.hbm %s899_s0, 128 }
  0x16   :  { %p627_p8 = scmp.ne.s32.totalorder %s899_s0, %s626_s19  ;;  %p630_p9 = scmp.lt.u32.totalorder %s626_s19, %s899_s0 }
  0x18   :  { %p632_p10 = pnand %p630_p9, %p627_p8 }
  0x1a   :  { %635 = shalt.err (!%p632_p10)
}
  0x1b   :  { %s636_s24 = scalar_lea.vmem %s774_s27, 128  ;;  %p641_p12 = scmp.lt.s32.totalorder %s774_s27, %s774_s27 }
  0x1c   :  { %p637_p11 = scmp.ne.s32.totalorder %s774_s27, %s636_s24  ;;  %p642_p13 = scmp.lt.s32.totalorder %s636_s24, %s636_s24 }
  0x1e   :  { %p643_p0 = por %p642_p13, %p641_p12 }
  0x20   :  { %p644_p1 = pnand %p643_p0, %p637_p11 }
  0x22   :  { %647 = shalt.err (!%p644_p1)
}
  0x23   :  { %27 = dma.hbm_to_vmem [thread:$0]  %s899_s0, 128, %s774_s27, [#allocation3], %s724_s13, %s724_s13, %s725_s14  }
  0x24   :  { %s726_s26 = smov [#allocation7]   ;;  %s727_s29 = smov [#allocation8]  }
  0x25   :  { %s47_s28 = sshll.u32 %s726_s26, 4  ;;  %s61_s30 = sshll.u32 %s727_s29, 4  ;;  %s48_s28 = int_to_ptr.vmem [resolvable:$true] %s47_s28  ;;  %s811_s30 = int_to_ptr.vmem [resolvable:$true] %s61_s30 }
  0x26   :  { %s648_s10 = scalar_lea.hbm %s902_s3, 1024 }
  0x27   :  { %p649_p2 = scmp.ne.s32.totalorder %s902_s3, %s648_s10  ;;  %p652_p3 = scmp.lt.u32.totalorder %s648_s10, %s902_s3 }
  0x29   :  { %p654_p4 = pnand %p652_p3, %p649_p2 }
  0x2b   :  { %657 = shalt.err (!%p654_p4)
}
  0x2c   :  { %s658_s0 = scalar_lea.vmem %s48_s28, 1024  ;;  %p663_p6 = scmp.lt.s32.totalorder %s48_s28, %s48_s28 }
  0x2d   :  { %p659_p5 = scmp.ne.s32.totalorder %s48_s28, %s658_s0  ;;  %p664_p7 = scmp.lt.s32.totalorder %s658_s0, %s658_s0 }
  0x2f   :  { %p665_p8 = por %p664_p7, %p663_p6 }
  0x31   :  { %p666_p9 = pnand %p665_p8, %p659_p5 }
  0x33   :  { %669 = shalt.err (!%p666_p9)
}
  0x34   :  { %53 = dma.hbm_to_vmem [thread:$0]  %s902_s3, 1024, %s48_s28, [#allocation6], %s724_s13, %s724_s13, %s725_s14  }
  0x35   :  { %s670_s20 = scalar_lea.hbm %s904_s5, 1024 }
  0x36   :  { %p671_p10 = scmp.ne.s32.totalorder %s904_s5, %s670_s20  ;;  %p674_p11 = scmp.lt.u32.totalorder %s670_s20, %s904_s5 }
  0x38   :  { %p676_p12 = pnand %p674_p11, %p671_p10 }
  0x3a   :  { %679 = shalt.err (!%p676_p12)
}
  0x3b   :  { %s680_s1 = scalar_lea.vmem %s811_s30, 1024  ;;  %p685_p0 = scmp.lt.s32.totalorder %s811_s30, %s811_s30 }
  0x3c   :  { %p681_p13 = scmp.ne.s32.totalorder %s811_s30, %s680_s1  ;;  %p686_p1 = scmp.lt.s32.totalorder %s680_s1, %s680_s1 }
  0x3e   :  { %p687_p2 = por %p686_p1, %p685_p0 }
  0x40   :  { %p688_p3 = pnand %p687_p2, %p681_p13 }
  0x42   :  { %691 = shalt.err (!%p688_p3)
}
  0x43   :  { %67 = dma.hbm_to_vmem [thread:$0]  %s904_s5, 1024, %s811_s30, [#allocation9], %s724_s13, %s724_s13, %s725_s14  }
  0x44   :  { %714 = dma.done.wait [#allocation3], 128  }
  0x45   :  { %715 = vsyncadd [#allocation3], 4294967168 }
  0x46   :  { %716 = dma.done.wait [#allocation6], 2048  }
  0x47   :  { %717 = vsyncadd [#allocation6], 4294965248 }
  0x48   :  { %718 = dma.done.wait [#allocation9], 1024  }
  0x49   :  { %719 = vsyncadd [#allocation9], 4294966272  ;;  %v728_v0 = vmov 0.0   ;;  %vm729_vm0 = vmmov 0   ;;  %v579_v1 = vld [vmem:[#allocation5] sm:$0xff]   ;;  %v580_v2 = vld [vmem:[#allocation5 + $0x8] sm:$0xff]  }
  0x4a   :  { %507 = vmatprep.subr.bf16.mxu0 %v728_v0  ;;  %523 = vmatprep.mubr.msk.bf16.mxu0 %vm729_vm0, %v728_v0  ;;  %v581_v3 = vld [vmem:[#allocation5 + $0x10] sm:$0xff]   ;;  %v588_v4 = vld [vmem:[#allocation7] sm:$0xff]   ;;  %v582_v5 = vld [vmem:[#allocation5 + $0x18] sm:$0xff]   ;;  %v730_v32 = vmov 0   ;;  %s731_s29 = smov [#allocation10]  }
  0x4b   :  { %527 = vmatprep.subr.bf16.mxu1 %v728_v0  ;;  %543 = vmatprep.mubr.msk.bf16.mxu1 %vm729_vm0, %v728_v0  ;;  %v589_v6 = vld [vmem:[#allocation7 + $0x8] sm:$0xff]   ;;  %v583_v7 = vld [vmem:[#allocation5 + $0x20] sm:$0xff]   ;;  %v590_v8 = vld [vmem:[#allocation7 + $0x10] sm:$0xff]   ;;  %s438_s30 = sshll.u32 %s731_s29, 4  ;;  %s439_s30 = int_to_ptr.vmem [resolvable:$true] %s438_s30 }
  0x4c   :  { %508 = vmatpush3.bf16.msra.mxu0 %v579_v1  ;;  %528 = vmatpush3.bf16.msra.mxu1 %v588_v4  ;;  %v584_v9 = vld [vmem:[#allocation5 + $0x28] sm:$0xff]   ;;  %v591_v10 = vld [vmem:[#allocation7 + $0x18] sm:$0xff]   ;;  %v585_v11 = vld [vmem:[#allocation5 + $0x30] sm:$0xff]   ;;  %p697_p5 = scmp.lt.s32.totalorder %s439_s30, %s439_s30 }
  0x4d   :  { %509 = vmatprep.subr.bf16.mxu0 %v728_v0  ;;  %529 = vmatprep.subr.bf16.mxu1 %v728_v0  ;;  %v592_v12 = vld [vmem:[#allocation7 + $0x20] sm:$0xff]   ;;  %v586_v13 = vld [vmem:[#allocation5 + $0x38] sm:$0xff]   ;;  %v593_v14 = vld [vmem:[#allocation7 + $0x28] sm:$0xff]  }
  0x4e   :  { %v587_v15 = vld [vmem:[#allocation2] sm:$0xff]   ;;  %v594_v16 = vld [vmem:[#allocation7 + $0x30] sm:$0xff]   ;;  %v596_v18 = vld [vmem:[#allocation8] sm:$0xff]  }
  0x4f   :  { %v595_v17 = vld [vmem:[#allocation7 + $0x38] sm:$0xff]   ;;  %v597_v19 = vld [vmem:[#allocation8 + $0x8] sm:$0xff]   ;;  %v598_v20 = vld [vmem:[#allocation8 + $0x10] sm:$0xff]  }
  0x50   :  { %510 = vmatpush3.bf16.msra.mxu0 %v580_v2  ;;  %530 = vmatpush3.bf16.msra.mxu1 %v589_v6  ;;  %v599_v21 = vld [vmem:[#allocation8 + $0x18] sm:$0xff]   ;;  %v600_v22 = vld [vmem:[#allocation8 + $0x20] sm:$0xff]   ;;  %v601_v23 = vld [vmem:[#allocation8 + $0x28] sm:$0xff]  }
  0x51   :  { %511 = vmatprep.subr.bf16.mxu0 %v728_v0  ;;  %531 = vmatprep.subr.bf16.mxu1 %v728_v0  ;;  %v452_v24 = vld [vmem:[%s901_s2] ss:$0 sm:$0xff]  ;;  %v602_v34 = vld [vmem:[#allocation8 + $0x30] sm:$0xff]  }
  0x52   :  { %v603_v35 = vld [vmem:[#allocation8 + $0x38] sm:$0xff]  }
  0x53   :  { %v462_v36 = vld [vmem:[%s903_s4] ss:$0 sm:$0xff]  ;;  %s692_s4 = scalar_lea.vmem %s439_s30, 256 }
  0x54   :  { %512 = vmatpush3.bf16.msra.mxu0 %v581_v3  ;;  %532 = vmatpush3.bf16.msra.mxu1 %v590_v8  ;;  %v471_v45 = vld [vmem:[%s905_s6] ss:$0 sm:$0xff]  ;;  %p693_p4 = scmp.ne.s32.totalorder %s439_s30, %s692_s4  ;;  %p698_p6 = scmp.lt.s32.totalorder %s692_s4, %s692_s4 }
  0x55   :  { %513 = vmatprep.subr.bf16.mxu0 %v728_v0  ;;  %533 = vmatprep.subr.bf16.mxu1 %v728_v0 }
  0x56   :  { %p699_p7 = por %p698_p6, %p697_p5 }
  0x58   :  { %514 = vmatpush3.bf16.msra.mxu0 %v582_v5  ;;  %534 = vmatpush3.bf16.msra.mxu1 %v591_v10  ;;  %p700_p8 = pnand %p699_p7, %p693_p4 }
  0x59   :  { %515 = vmatprep.subr.bf16.mxu0 %v728_v0  ;;  %535 = vmatprep.subr.bf16.mxu1 %v728_v0 }
  0x5c   :  { %516 = vmatpush3.bf16.msra.mxu0 %v583_v7  ;;  %536 = vmatpush3.bf16.msra.mxu1 %v592_v12 }
  0x5d   :  { %517 = vmatprep.subr.bf16.mxu0 %v728_v0  ;;  %537 = vmatprep.subr.bf16.mxu1 %v728_v0 }
  0x60   :  { %518 = vmatpush3.bf16.msra.mxu0 %v584_v9  ;;  %538 = vmatpush3.bf16.msra.mxu1 %v593_v14 }
  0x61   :  { %519 = vmatprep.subr.bf16.mxu0 %v728_v0  ;;  %539 = vmatprep.subr.bf16.mxu1 %v728_v0 }
  0x64   :  { %520 = vmatpush3.bf16.msra.mxu0 %v585_v11  ;;  %540 = vmatpush3.bf16.msra.mxu1 %v594_v16 }
  0x65   :  { %521 = vmatprep.subr.bf16.mxu0 %v728_v0  ;;  %541 = vmatprep.subr.bf16.mxu1 %v728_v0 }
  0x68   :  { %522 = vmatpush3.bf16.msra.mxu0 %v586_v13  ;;  %542 = vmatpush3.bf16.msra.mxu1 %v595_v17 }
  0x69   :  { %547 = vmatprep.subr.bf16.mxu0 %v728_v0 }
  0x6b   :  { %524 = vmatmul.mubr.bf16.vlgmr.msra.gmra.mrb[0].mxu0 %v587_v15 }
  0x6c   :  { %563 = vmatprep.mubr.msk.bf16.mxu0 %vm729_vm0, %v728_v0  ;;  %548 = vmatpush3.bf16.msra.mxu0 %v596_v18 }
  0x6d   :  { %549 = vmatprep.subr.bf16.mxu0 %v728_v0 }
  0x70   :  { %550 = vmatpush3.bf16.msra.mxu0 %v597_v19 }
  0x71   :  { %551 = vmatprep.subr.bf16.mxu0 %v728_v0 }
  0x74   :  { %552 = vmatpush3.bf16.msra.mxu0 %v598_v20 }
  0x75   :  { %553 = vmatprep.subr.bf16.mxu0 %v728_v0 }
  0x78   :  { %554 = vmatpush3.bf16.msra.mxu0 %v599_v21 }
  0x79   :  { %555 = vmatprep.subr.bf16.mxu0 %v728_v0 }
  0x7c   :  { %556 = vmatpush3.bf16.msra.mxu0 %v600_v22 }
  0x7d   :  { %557 = vmatprep.subr.bf16.mxu0 %v728_v0 }
  0x80   :  { %558 = vmatpush3.bf16.msra.mxu0 %v601_v23 }
  0x81   :  { %559 = vmatprep.subr.bf16.mxu0 %v728_v0 }
  0x84   :  { %560 = vmatpush3.bf16.msra.mxu0 %v602_v34 }
  0x85   :  { %561 = vmatprep.subr.bf16.mxu0 %v728_v0 }
  0x88   :  { %562 = vmatpush3.bf16.msra.mxu0 %v603_v35 }
 0x13e   :  { %v196_v25 = vpop.f32.mrb[0].mxu0 }
 0x13f   :  { %v525_v26 = vpop.f32.mrb[1].mxu0  ;;  %v197_v28 = vadd.f32 %v452_v24, %v196_v25 }
 0x140   :  { %v199_v27 = vpop.f32.mrb[2].mxu0 }
 0x141   :  { %v200_v29 = vadd.f32 %v452_v24, %v199_v27  ;;  %v526_v30 = vpop.f32.mrb[3].mxu0 }
 0x143   :  { %v203_v31 = vpack.c.bf16 %v200_v29, %v197_v28 }
 0x145   :  { %v204_v33 = vmax.bf16 %v730_v32, %v203_v31 }
 0x147   :  { %544 = vmatmul.mubr.bf16.vlgmr.msra.gmra.mrb[0].mxu1 %v204_v33 }
 0x21a   :  { %v310_v37 = vpop.f32.mrb[0].mxu1 }
 0x21b   :  { %v545_v38 = vpop.f32.mrb[1].mxu1  ;;  %v311_v40 = vadd.f32 %v462_v36, %v310_v37 }
 0x21c   :  { %v313_v39 = vpop.f32.mrb[2].mxu1 }
 0x21d   :  { %v314_v41 = vadd.f32 %v462_v36, %v313_v39  ;;  %v546_v42 = vpop.f32.mrb[3].mxu1 }
 0x21f   :  { %v317_v43 = vpack.c.bf16 %v314_v41, %v311_v40 }
 0x221   :  { %v318_v44 = vmax.bf16 %v730_v32, %v317_v43 }
 0x223   :  { %564 = vmatmul.mubr.bf16.vlgmr.msra.gmra.mrb[4].mxu0 %v318_v44 }
 0x2f6   :  { %v424_v46 = vpop.f32.mrb[4].mxu0 }
 0x2f7   :  { %v425_v47 = vadd.f32 %v471_v45, %v424_v46  ;;  %v565_v48 = vpop.f32.mrb[5].mxu0 }
 0x2f8   :  { %v427_v49 = vpop.f32.mrb[6].mxu0 }
 0x2f9   :  { %431 = vst [vmem:[#allocation10] sm:$0xff] %v425_v47  ;;  %v428_v50 = vadd.f32 %v471_v45, %v427_v49  ;;  %v566_v51 = vpop.f32.mrb[7].mxu0 }
 0x2fb   :  { %432 = vst [vmem:[#allocation10 + $0x8] sm:$0xff] %v428_v50 }
 0x2fc   :  { %703 = shalt.err (!%p700_p8)
}
 0x2fd   :  { %s704_s9 = scalar_lea.hbm %s906_s7, 256 }
 0x2fe   :  { %p705_p9 = scmp.ne.s32.totalorder %s906_s7, %s704_s9  ;;  %p708_p10 = scmp.lt.u32.totalorder %s704_s9, %s906_s7 }
 0x300   :  { %p710_p11 = pnand %p708_p10, %p705_p9 }
 0x302   :  { %713 = shalt.err (!%p710_p11)
}
 0x303   :  { %s732_s16 = smov 128   ;;  %s733_s0 = smov 8  }
 0x304   :  { %444 = dma.vmem_to_hbm [thread:$0]  %s439_s30, 256, %s906_s7, [#allocation4], %s732_s16, %s732_s16, %s733_s0  }
 0x305   :  { %720 = dma.done.wait [#allocation4], 256  }
 0x306   :  { %721 = vsyncadd [#allocation4], 4294967040 }
 0x307   :  { %448 = vsyncpa [#allocation3], 1 }
 0x308   :  { %449 = vsyncpa [#allocation6], 1 }
 0x309   :  { %450 = vsyncpa [#allocation9], 1 }
 0x30a   :  { %451 = vsyncpa [#allocation4], 1 }

</bundles_post_ra>
